<compile_context>
chip_gen: v7x
topology: tpu7x:2x2x1
jax: 0.10.0
libtpu: 0.0.40
codegen_flags: <defaults>
</compile_context>

<pallas_src>
import functools

import jax
import jax.numpy as jnp
from jax.experimental import pallas as pl
from jax.experimental.pallas import tpu as pltpu


def _f1_loss_kernel(pred_ref, lab_ref, w_ref, o_ref,
                    tp_acc, sp_acc, st_acc, *, epsilon, average):
    # pred_ref: (C, TB) logits  (classes on sublanes, batch on lanes)
    # lab_ref:  (1, TB) int32 labels; padding columns carry -1
    # w_ref:    (C, 1) class weights (ones when weight=None)
    # o_ref:    (1, 1) SMEM scalar output
    # *_acc:    (C, 1) f32 VMEM accumulators (tp, sum_p, sum_t)
    step = pl.program_id(0)

    @pl.when(step == 0)
    def _init():
        tp_acc[...] = jnp.zeros_like(tp_acc)
        sp_acc[...] = jnp.zeros_like(sp_acc)
        st_acc[...] = jnp.zeros_like(st_acc)

    logits = pred_ref[...].astype(jnp.float32)             # (C, TB)
    labels = lab_ref[...]                                   # (1, TB) int32
    C, TB = logits.shape

    # One-hot mask built in-kernel; padded columns (label == -1) match nothing.
    class_iota = jax.lax.broadcasted_iota(jnp.int32, (C, TB), 0)
    t = (class_iota == labels).astype(jnp.float32)          # (C, TB)
    valid = (labels >= 0).astype(jnp.float32)               # (1, TB)

    # Softmax over the class (sublane) axis; EUP reciprocal for the denom.
    m = jnp.max(logits, axis=0, keepdims=True)
    e = jnp.exp(logits - m)
    p = e * pl.reciprocal(jnp.sum(e, axis=0, keepdims=True), approx=True)
    p = p * valid                                            # zero padded cols

    # Per-class partial sums over the batch (lane) axis.
    tp_acc[...] += jnp.sum(p * t, axis=1, keepdims=True)     # (C, 1)
    sp_acc[...] += jnp.sum(p, axis=1, keepdims=True)         # (C, 1) = tp + fp
    st_acc[...] += jnp.sum(t, axis=1, keepdims=True)         # (C, 1) = tp + fn

    @pl.when(step == pl.num_programs(0) - 1)
    def _epilogue():
        tp = tp_acc[...]
        fp = sp_acc[...] - tp
        fn = st_acc[...] - tp
        precision = tp / (tp + fp + epsilon)
        recall = tp / (tp + fn + epsilon)
        f1 = 2.0 * (precision * recall) / (precision + recall + epsilon)
        f1 = f1 * w_ref[...].astype(jnp.float32)
        if average == "macro":
            loss = 1.0 - jnp.mean(f1)
        elif average == "weighted":
            support = st_acc[...]
            loss = 1.0 - jnp.sum(f1 * support) / jnp.sum(support)
        else:
            raise ValueError("Average must be either 'macro' or 'weighted'")
        o_ref[0, 0] = loss


def _round_up(x, m):
    return (x + m - 1) // m * m


def _choose_batch_tile(batch, num_classes, vmem_budget_bytes=4 * 1024 * 1024):
    # Per-tile logits bytes ~= C * TB * 4.  Keep the double-buffered working
    # set well inside the scoped-VMEM default on every generation (including
    # v7x's halved physical VMEM).  Lane tiles must be multiples of 128.
    cap = max(128, (vmem_budget_bytes // (max(num_classes, 1) * 4)) // 128 * 128)
    return int(min(_round_up(batch, 128), cap))


def f1_score_loss(y_pred, y_true, *, epsilon=1e-7, average="macro",
                  weight=None, batch_tile=None):
    """Pallas implementation of F1ScoreLoss.forward (returns scalar f32).

    y_pred: (B, C) float logits.   y_true: (B,) integer class labels.
    """
    if average not in ("macro", "weighted"):
        raise ValueError("Average must be either 'macro' or 'weighted'")

    B, C = y_pred.shape

    # Lane-dense layout: batch on the 128-lane axis, classes on sublanes.
    pred_t = jnp.transpose(y_pred)                      # (C, B), original dtype
    labels = jnp.asarray(y_true, jnp.int32).reshape(1, B)

    if batch_tile is None:
        TB = _choose_batch_tile(B, C)
    else:
        TB = int(_round_up(int(batch_tile), 128))
    B_pad = _round_up(B, TB)
    if B_pad != B:
        pad = B_pad - B
        pred_t = jnp.pad(pred_t, ((0, 0), (0, pad)))
        labels = jnp.pad(labels, ((0, 0), (0, pad)), constant_values=-1)

    if weight is None:
        w = jnp.ones((C, 1), jnp.float32)
    else:
        w = jnp.asarray(weight, jnp.float32).reshape(C, 1)

    grid = (B_pad // TB,)
    kernel = functools.partial(_f1_loss_kernel, epsilon=epsilon, average=average)

    out = pl.pallas_call(
        kernel,
        grid_spec=pltpu.PrefetchScalarGridSpec(
            num_scalar_prefetch=0,
            grid=grid,
            in_specs=[
                pl.BlockSpec((C, TB), lambda i: (0, i)),   # logits (C, B_pad)
                pl.BlockSpec((1, TB), lambda i: (0, i)),   # labels (1, B_pad)
                pl.BlockSpec((C, 1), lambda i: (0, 0)),    # class weights
            ],
            out_specs=pl.BlockSpec(memory_space=pltpu.SMEM),
            scratch_shapes=[
                pltpu.VMEM((C, 1), jnp.float32),   # tp accumulator
                pltpu.VMEM((C, 1), jnp.float32),   # sum_p accumulator
                pltpu.VMEM((C, 1), jnp.float32),   # sum_t accumulator
            ],
        ),
        out_shape=jax.ShapeDtypeStruct((1, 1), jnp.float32),
        # Batch axis carries accumulators -> reduction ('arbitrary').
        # TODO(synk): on v7x, split the batch reduction across the 2 TensorCores
        # (leading 'parallel' axis with per-core partials + a tiny combine).
        compiler_params=pltpu.CompilerParams(
            dimension_semantics=("arbitrary",),
        ),
    )(pred_t, labels, w)
    return out[0, 0]


def _reference(y_pred, y_true, epsilon=1e-7, average="macro", weight=None):
    """Plain-JAX reference mirroring the PyTorch forward."""
    C = y_pred.shape[1]
    p = jax.nn.softmax(y_pred.astype(jnp.float32), axis=1)
    t = jax.nn.one_hot(jnp.asarray(y_true, jnp.int32), C, dtype=jnp.float32)
    tp = jnp.sum(p * t, axis=0)
    fp = jnp.sum((1.0 - t) * p, axis=0)
    fn = jnp.sum(t * (1.0 - p), axis=0)
    precision = tp / (tp + fp + epsilon)
    recall = tp / (tp + fn + epsilon)
    f1 = 2.0 * precision * recall / (precision + recall + epsilon)
    if weight is not None:
        f1 = f1 * jnp.asarray(weight, jnp.float32)
    if average == "macro":
        return 1.0 - jnp.mean(f1)
    support = jnp.sum(t, axis=0)
    return 1.0 - jnp.sum(f1 * support) / jnp.sum(support)


if __name__ == "__main__":
    key = jax.random.PRNGKey(0)
    batch, num_classes = 16, 8
    k1, k2, k3, k4 = jax.random.split(key, 4)

    y_pred = jax.random.normal(k1, (batch, num_classes), jnp.float32)
    y_true = jax.random.randint(k2, (batch,), 0, num_classes)

    # Tolerance accommodates the EUP approximate-reciprocal softmax path.
    TOL = 1e-3

    # macro average (module defaults: average='macro', weight=None)
    loss = jax.block_until_ready(f1_score_loss(y_pred, y_true, epsilon=1e-7))
    ref = _reference(y_pred, y_true, epsilon=1e-7)
    assert jnp.allclose(loss, ref, atol=TOL, rtol=TOL), (loss, ref)

    # weighted average with deterministic class weights
    w = jnp.linspace(0.5, 1.5, num_classes, dtype=jnp.float32)
    loss_w = jax.block_until_ready(
        f1_score_loss(y_pred, y_true, epsilon=1e-7, average="weighted", weight=w))
    ref_w = _reference(y_pred, y_true, epsilon=1e-7, average="weighted", weight=w)
    assert jnp.allclose(loss_w, ref_w, atol=TOL, rtol=TOL), (loss_w, ref_w)

    # multi-tile path: batch not a multiple of the tile -> padding + grid
    # accumulation with init/epilogue via pl.when.
    b2 = 300
    y_pred2 = jax.random.normal(k3, (b2, num_classes), jnp.float32)
    y_true2 = jax.random.randint(k4, (b2,), 0, num_classes)
    loss2 = jax.block_until_ready(
        f1_score_loss(y_pred2, y_true2, epsilon=1e-7, batch_tile=128))
    ref2 = _reference(y_pred2, y_true2, epsilon=1e-7)
    assert jnp.allclose(loss2, ref2, atol=TOL, rtol=TOL), (loss2, ref2)

    print("KERNEL_OK")
</pallas_src>

<mosaic_0001>
module attributes {stable_mosaic.version = 11 : i64} {
  func.func @_f1_loss_kernel(%arg0: i32, %arg1: memref<8x128xf32, #tpu.memory_space<vmem>>, %arg2: memref<1x128xi32, #tpu.memory_space<vmem>>, %arg3: memref<8x1xf32, #tpu.memory_space<vmem>>, %arg4: memref<1x1xf32, #tpu.memory_space<smem>>, %arg5: memref<8x1xf32, #tpu.memory_space<vmem>>, %arg6: memref<8x1xf32, #tpu.memory_space<vmem>>, %arg7: memref<8x1xf32, #tpu.memory_space<vmem>>) attributes {dimension_semantics = [#tpu.dimension_semantics<arbitrary>], iteration_bounds = array<i64: 1>, scalar_prefetch = 0 : i64, scratch_operands = 3 : i64, tpu.core_type = #tpu.core_type<tc>, window_params = [{transform_indices = @transform_0, window_bounds = array<i64: 8, 128>}, {transform_indices = @transform_1, window_bounds = array<i64: 1, 128>}, {pipeline_mode = #tpu.pipeline_mode<synchronous>, transform_indices = @transform_2, window_bounds = array<i64: 8, 1>}, {transform_indices = @transform_3, window_bounds = array<i64: 1, 1>}]} {
    %c0_i32 = arith.constant 0 : i32
    %0 = arith.cmpi eq, %arg0, %c0_i32 : i32
    %1 = arith.extui %0 : i1 to i32
    %c0_i32_0 = arith.constant 0 : i32
    %2 = arith.cmpi ne, %1, %c0_i32_0 : i32
    scf.if %2 {
      %cst_23 = arith.constant 0.000000e+00 : f32
      %45 = vector.broadcast %cst_23 : f32 to vector<8x1xf32>
      %c0_24 = arith.constant 0 : index
      %c0_25 = arith.constant 0 : index
      %46 = vector.load %arg5[%c0_24, %c0_25] : memref<8x1xf32, #tpu.memory_space<vmem>>, vector<8x1xf32>
      tpu.vector_store %arg5[%c0_24, %c0_25], %45 {strides = array<i32>} : memref<8x1xf32, #tpu.memory_space<vmem>>, vector<8x1xf32>,
      %cst_26 = arith.constant 0.000000e+00 : f32
      %47 = vector.broadcast %cst_26 : f32 to vector<8x1xf32>
      %c0_27 = arith.constant 0 : index
      %c0_28 = arith.constant 0 : index
      %48 = vector.load %arg6[%c0_27, %c0_28] : memref<8x1xf32, #tpu.memory_space<vmem>>, vector<8x1xf32>
      tpu.vector_store %arg6[%c0_27, %c0_28], %47 {strides = array<i32>} : memref<8x1xf32, #tpu.memory_space<vmem>>, vector<8x1xf32>,
      %cst_29 = arith.constant 0.000000e+00 : f32
      %49 = vector.broadcast %cst_29 : f32 to vector<8x1xf32>
      %c0_30 = arith.constant 0 : index
      %c0_31 = arith.constant 0 : index
      %50 = vector.load %arg7[%c0_30, %c0_31] : memref<8x1xf32, #tpu.memory_space<vmem>>, vector<8x1xf32>
      tpu.vector_store %arg7[%c0_30, %c0_31], %49 {strides = array<i32>} : memref<8x1xf32, #tpu.memory_space<vmem>>, vector<8x1xf32>,
    } else {
    }
    %c0 = arith.constant 0 : index
    %c0_1 = arith.constant 0 : index
    %3 = vector.load %arg1[%c0, %c0_1] : memref<8x128xf32, #tpu.memory_space<vmem>>, vector<8x128xf32>
    %c0_2 = arith.constant 0 : index
    %c0_3 = arith.constant 0 : index
    %4 = vector.load %arg2[%c0_2, %c0_3] : memref<1x128xi32, #tpu.memory_space<vmem>>, vector<1x128xi32>
    %5 = tpu.iota {dimensions = array<i32: 0>} : vector<8x128xi32>
    %6 = vector.broadcast %4 : vector<1x128xi32> to vector<8x128xi32>
    %7 = arith.cmpi eq, %5, %6 : vector<8x128xi32>
    %8 = arith.extui %7 : vector<8x128xi1> to vector<8x128xi32>
    %9 = arith.sitofp %8 : vector<8x128xi32> to vector<8x128xf32>
    %c0_i32_4 = arith.constant 0 : i32
    %10 = vector.broadcast %c0_i32_4 : i32 to vector<1x128xi32>
    %11 = arith.cmpi sge, %4, %10 : vector<1x128xi32>
    %12 = arith.extui %11 : vector<1x128xi1> to vector<1x128xi32>
    %13 = arith.sitofp %12 : vector<1x128xi32> to vector<1x128xf32>
    %cst = arith.constant dense<0xFF800000> : vector<128xf32>
    %14 = vector.multi_reduction <maximumf>, %3, %cst [0] : vector<8x128xf32> to vector<128xf32>
    %15 = vector.shape_cast %14 : vector<128xf32> to vector<1x128xf32>
    %16 = vector.broadcast %15 : vector<1x128xf32> to vector<8x128xf32>
    %17 = arith.subf %3, %16 : vector<8x128xf32>
    %18 = math.exp %17 : vector<8x128xf32>
    %cst_5 = arith.constant dense<0.000000e+00> : vector<128xf32>
    %19 = vector.multi_reduction <add>, %18, %cst_5 [0] : vector<8x128xf32> to vector<128xf32>
    %20 = vector.shape_cast %19 : vector<128xf32> to vector<1x128xf32>
    %21 = tpu.reciprocal %20 {approx = true} : vector<1x128xf32> -> vector<1x128xf32>
    %22 = vector.broadcast %21 : vector<1x128xf32> to vector<8x128xf32>
    %23 = arith.mulf %18, %22 : vector<8x128xf32>
    %24 = vector.broadcast %13 : vector<1x128xf32> to vector<8x128xf32>
    %25 = arith.mulf %23, %24 : vector<8x128xf32>
    %c0_6 = arith.constant 0 : index
    %c0_7 = arith.constant 0 : index
    %26 = vector.load %arg5[%c0_6, %c0_7] : memref<8x1xf32, #tpu.memory_space<vmem>>, vector<8x1xf32>
    %27 = arith.mulf %25, %9 : vector<8x128xf32>
    %cst_8 = arith.constant dense<0.000000e+00> : vector<8xf32>
    %28 = vector.multi_reduction <add>, %27, %cst_8 [1] : vector<8x128xf32> to vector<8xf32>
    %29 = vector.shape_cast %28 : vector<8xf32> to vector<8x1xf32>
    %30 = arith.addf %26, %29 : vector<8x1xf32>
    %c0_9 = arith.constant 0 : index
    %c0_10 = arith.constant 0 : index
    %31 = vector.load %arg5[%c0_9, %c0_10] : memref<8x1xf32, #tpu.memory_space<vmem>>, vector<8x1xf32>
    tpu.vector_store %arg5[%c0_9, %c0_10], %30 {strides = array<i32>} : memref<8x1xf32, #tpu.memory_space<vmem>>, vector<8x1xf32>,
    %c0_11 = arith.constant 0 : index
    %c0_12 = arith.constant 0 : index
    %32 = vector.load %arg6[%c0_11, %c0_12] : memref<8x1xf32, #tpu.memory_space<vmem>>, vector<8x1xf32>
    %cst_13 = arith.constant dense<0.000000e+00> : vector<8xf32>
    %33 = vector.multi_reduction <add>, %25, %cst_13 [1] : vector<8x128xf32> to vector<8xf32>
    %34 = vector.shape_cast %33 : vector<8xf32> to vector<8x1xf32>
    %35 = arith.addf %32, %34 : vector<8x1xf32>
    %c0_14 = arith.constant 0 : index
    %c0_15 = arith.constant 0 : index
    %36 = vector.load %arg6[%c0_14, %c0_15] : memref<8x1xf32, #tpu.memory_space<vmem>>, vector<8x1xf32>
    tpu.vector_store %arg6[%c0_14, %c0_15], %35 {strides = array<i32>} : memref<8x1xf32, #tpu.memory_space<vmem>>, vector<8x1xf32>,
    %c0_16 = arith.constant 0 : index
    %c0_17 = arith.constant 0 : index
    %37 = vector.load %arg7[%c0_16, %c0_17] : memref<8x1xf32, #tpu.memory_space<vmem>>, vector<8x1xf32>
    %cst_18 = arith.constant dense<0.000000e+00> : vector<8xf32>
    %38 = vector.multi_reduction <add>, %9, %cst_18 [1] : vector<8x128xf32> to vector<8xf32>
    %39 = vector.shape_cast %38 : vector<8xf32> to vector<8x1xf32>
    %40 = arith.addf %37, %39 : vector<8x1xf32>
    %c0_19 = arith.constant 0 : index
    %c0_20 = arith.constant 0 : index
    %41 = vector.load %arg7[%c0_19, %c0_20] : memref<8x1xf32, #tpu.memory_space<vmem>>, vector<8x1xf32>
    tpu.vector_store %arg7[%c0_19, %c0_20], %40 {strides = array<i32>} : memref<8x1xf32, #tpu.memory_space<vmem>>, vector<8x1xf32>,
    %c0_i32_21 = arith.constant 0 : i32
    %42 = arith.cmpi eq, %arg0, %c0_i32_21 : i32
    %43 = arith.extui %42 : i1 to i32
    %c0_i32_22 = arith.constant 0 : i32
    %44 = arith.cmpi ne, %43, %c0_i32_22 : i32
    scf.if %44 {
      %c0_23 = arith.constant 0 : index
      %c0_24 = arith.constant 0 : index
      %45 = vector.load %arg5[%c0_23, %c0_24] : memref<8x1xf32, #tpu.memory_space<vmem>>, vector<8x1xf32>
      %c0_25 = arith.constant 0 : index
      %c0_26 = arith.constant 0 : index
      %46 = vector.load %arg6[%c0_25, %c0_26] : memref<8x1xf32, #tpu.memory_space<vmem>>, vector<8x1xf32>
      %47 = arith.subf %46, %45 : vector<8x1xf32>
      %c0_27 = arith.constant 0 : index
      %c0_28 = arith.constant 0 : index
      %48 = vector.load %arg7[%c0_27, %c0_28] : memref<8x1xf32, #tpu.memory_space<vmem>>, vector<8x1xf32>
      %49 = arith.subf %48, %45 : vector<8x1xf32>
      %50 = arith.addf %45, %47 : vector<8x1xf32>
      %cst_29 = arith.constant 1.000000e-07 : f32
      %51 = vector.broadcast %cst_29 : f32 to vector<8x1xf32>
      %52 = arith.addf %50, %51 : vector<8x1xf32>
      %53 = arith.divf %45, %52 : vector<8x1xf32>
      %54 = arith.addf %45, %49 : vector<8x1xf32>
      %cst_30 = arith.constant 1.000000e-07 : f32
      %55 = vector.broadcast %cst_30 : f32 to vector<8x1xf32>
      %56 = arith.addf %54, %55 : vector<8x1xf32>
      %57 = arith.divf %45, %56 : vector<8x1xf32>
      %58 = arith.mulf %53, %57 : vector<8x1xf32>
      %cst_31 = arith.constant 2.000000e+00 : f32
      %59 = vector.broadcast %cst_31 : f32 to vector<8x1xf32>
      %60 = arith.mulf %59, %58 : vector<8x1xf32>
      %61 = arith.addf %53, %57 : vector<8x1xf32>
      %cst_32 = arith.constant 1.000000e-07 : f32
      %62 = vector.broadcast %cst_32 : f32 to vector<8x1xf32>
      %63 = arith.addf %61, %62 : vector<8x1xf32>
      %64 = arith.divf %60, %63 : vector<8x1xf32>
      %c0_33 = arith.constant 0 : index
      %c0_34 = arith.constant 0 : index
      %65 = vector.load %arg3[%c0_33, %c0_34] : memref<8x1xf32, #tpu.memory_space<vmem>>, vector<8x1xf32>
      %66 = arith.mulf %64, %65 : vector<8x1xf32>
      %67 = vector.shape_cast %66 : vector<8x1xf32> to vector<1x8x1xf32>
      %cst_35 = arith.constant dense<0.000000e+00> : vector<1xf32>
      %68 = vector.multi_reduction <add>, %67, %cst_35 [1, 2] : vector<1x8x1xf32> to vector<1xf32>
      %69 = vector.shape_cast %68 : vector<1xf32> to vector<1x1x1xf32>
      %70 = vector.extract %69[0, 0, 0] : f32 from vector<1x1x1xf32>
      %cst_36 = arith.constant 8.000000e+00 : f32
      %71 = arith.divf %70, %cst_36 : f32
      %cst_37 = arith.constant 1.000000e+00 : f32
      %72 = arith.subf %cst_37, %71 : f32
      %c0_38 = arith.constant 0 : index
      %c0_39 = arith.constant 0 : index
      %73 = memref.load %arg4[%c0_38, %c0_39] : memref<1x1xf32, #tpu.memory_space<smem>>
      memref.store %72, %arg4[%c0_38, %c0_39] : memref<1x1xf32, #tpu.memory_space<smem>>
    } else {
    }
    return
  }
  func.func @transform_0(%arg0: i32) -> (i32, i32) {
    %c0_i32 = arith.constant 0 : i32
    %c0_i32_0 = arith.constant 0 : i32
    return %c0_i32, %arg0 : i32, i32
  }
  func.func @transform_1(%arg0: i32) -> (i32, i32) {
    %c0_i32 = arith.constant 0 : i32
    %c0_i32_0 = arith.constant 0 : i32
    return %c0_i32, %arg0 : i32, i32
  }
  func.func @transform_2(%arg0: i32) -> (i32, i32) {
    %c0_i32 = arith.constant 0 : i32
    %c0_i32_0 = arith.constant 0 : i32
    %c0_i32_1 = arith.constant 0 : i32
    return %c0_i32, %c0_i32_0 : i32, i32
  }
  func.func @transform_3(%arg0: i32) -> (i32, i32) {
    %c0_i32 = arith.constant 0 : i32
    %c0_i32_0 = arith.constant 0 : i32
    %c0_i32_1 = arith.constant 0 : i32
    return %c0_i32, %c0_i32_0 : i32, i32
  }
}

</mosaic_0001>

<bundles_post_ra>
// kernel: tpu_custom_call.1
= control target key start
LH: loop header
LB: loop body
LE: loop exit
PB: predicated region body
PF: predicated region fallthrough
CT: control target
= control target key end

     0   :  { %v25_v0 = vlaneseq  ;;  %s209_s0 = inlined_call_operand.vmem [shape: f32[8,128], index: 0, kind: input, shape index: {}]   ;;  %s210_s1 = inlined_call_operand.vmem [shape: s32[1,128], index: 1, kind: input, shape index: {}]   ;;  %s211_s2 = inlined_call_operand.vmem [shape: f32[8,1], index: 2, kind: input, shape index: {}]   ;;  %s212_s3 = inlined_call_operand.hbm [shape: f32[1,1], index: 3, kind: output, shape index: {}]  }
   0x1   :  { %v23_v1 = vld [vmem:[%s209_s0] sm:$0xff] }
   0x2   :  { %8 = vsyncpa [#allocation6], 0  ;;  %v37_v2 = vrot.slane %v23_v1, 4  ;;  %v26_v3 = vshrl.u32 %v25_v0, 7  ;;  %v24_v6 = vld [vmem:[%s210_s1] sm:$0x1] }
   0x3   :  { %v159_v10 = vmov 0.0   ;;  %vm19_vm1 = vcmask 7168   ;;  %vm34_vm2 = vcmp.ge.s32.totalorder %v24_v6, 0  ;;  %v100_v56 = vld [vmem:[%s211_s2] sm:$0xff]  ;;  %s147_s2 = scalar_lea.hbm %s212_s3, 16 }
   0x4   :  { %v38_v4 = vmax.f32 %v23_v1, %v37_v2  ;;  %v29_v5 = vsub.s32 0, %v26_v3  ;;  %22 = vst.msk [vmem:[#allocation4] sm:$0xff] %vm19_vm1, %v159_v10  ;;  %20 = vst.msk [vmem:[#allocation2] sm:$0xff] %vm19_vm1, %v159_v10  ;;  %v132_v23 = vsel %vm34_vm2, 1.0, %v159_v10  ;;  %p148_p0 = scmp.ne.s32.totalorder %s212_s3, %s147_s2  ;;  %p151_p1 = scmp.lt.u32.totalorder %s147_s2, %s212_s3 }
   0x5   :  { %21 = vst.msk [vmem:[#allocation3] sm:$0xff] %vm19_vm1, %v159_v10 }
   0x6   :  { %v39_v7 = vrot.slane %v38_v4, 2  ;;  %v30_v8 = vrot.slane %v24_v6, %v29_v5  ;;  %v58_v24 = vrot.slane %v132_v23, %v29_v5  ;;  %p153_p2 = pnand %p151_p1, %p148_p0 }
   0x8   :  { %v40_v9 = vmax.f32 %v38_v4, %v39_v7  ;;  %vm31_vm0 = vcmp.eq.s32.totalorder %v26_v3, %v30_v8 }
   0x9   :  { %v131_v11 = vsel %vm31_vm0, 1.0, %v159_v10 }
   0xa   :  { %v41_v12 = vrot.slane %v40_v9, 1  ;;  %74 = vadd.xlane.f32.xlu1 %v131_v11 }
   0xb   :  { %v73_v29 = vld [vmem:[#allocation4] sm:$0xff]  ;;  %v61_v32 = vld [vmem:[#allocation2] sm:$0xff] }
   0xc   :  { %v42_v13 = vmax.f32 %v40_v9, %v41_v12  ;;  %v68_v35 = vld [vmem:[#allocation3] sm:$0xff] }
   0xe   :  { %v43_v14 = vsub.f32 %v23_v1, %v42_v13 }
  0x10   :  { %v44_v15 = vmul.f32 1.442695, %v43_v14 }
  0x12   :  { %137 = vpow2.f32 %v44_v15 }
  0x1c   :  { %v138_v16 = vpop.eup %137 }
  0x1d   :  { %v46_v17 = vrot.slane %v138_v16, 4 }
  0x1f   :  { %v47_v18 = vadd.f32 %v138_v16, %v46_v17 }
  0x21   :  { %v48_v19 = vrot.slane %v47_v18, 2 }
  0x23   :  { %v49_v20 = vadd.f32 %v48_v19, %v47_v18 }
  0x25   :  { %v50_v21 = vrot.slane %v49_v20, 1 }
  0x27   :  { %v51_v22 = vadd.f32 %v50_v21, %v49_v20 }
  0x29   :  { %139 = vrcp.f32 %v51_v22 }
  0x33   :  { %v140_v25 = vpop.eup %139 }
  0x34   :  { %v53_v26 = vmul.f32 %v140_v25, %v138_v16 }
  0x36   :  { %v60_v27 = vmul.f32 %v58_v24, %v53_v26 }
  0x38   :  { %v62_v28 = vmul.f32 %v131_v11, %v60_v27 }
  0x3a   :  { %63 = vadd.xlane.f32.xlu0 %v62_v28 }
  0x3e   :  { %69 = vadd.xlane.f32.xlu0 %v60_v27 }
  0x97   :  { %v75_v30 = vpop.xlane.xlu1 %74 }
  0x98   :  { %v76_v31 = vadd.f32 %v75_v30, %v73_v29 }
  0x9a   :  { %77 = vst.msk [vmem:[#allocation4] sm:$0xff] %vm19_vm1, %v76_v31 }
  0xa1   :  { %v84_v38 = vld [vmem:[#allocation4] sm:$0xff] }
  0xc7   :  { %v64_v33 = vpop.xlane.xlu0 %63 }
  0xc8   :  { %v65_v34 = vadd.f32 %v64_v33, %v61_v32 }
  0xca   :  { %67 = vst.msk [vmem:[#allocation2] sm:$0xff] %vm19_vm1, %v65_v34 }
  0xcb   :  { %v70_v36 = vpop.xlane.xlu0 %69 }
  0xcc   :  { %v71_v37 = vadd.f32 %v70_v36, %v68_v35 }
  0xce   :  { %72 = vst.msk [vmem:[#allocation3] sm:$0xff] %vm19_vm1, %v71_v37 }
  0xd1   :  { %v81_v39 = vld [vmem:[#allocation2] sm:$0xff] }
  0xd2   :  { %v85_v40 = vsub.f32 %v84_v38, %v81_v39 }
  0xd4   :  { %v90_v41 = vadd.f32 %v85_v40, %v81_v39 }
  0xd5   :  { %v82_v42 = vld [vmem:[#allocation3] sm:$0xff] }
  0xd6   :  { %v83_v43 = vsub.f32 %v82_v42, %v81_v39  ;;  %v91_v44 = vadd.f32 1e-07, %v90_v41 }
  0xd8   :  { %v86_v45 = vadd.f32 %v83_v43, %v81_v39  ;;  %141 = vrcp.f32 %v91_v44 }
  0xda   :  { %v87_v46 = vadd.f32 1e-07, %v86_v45 }
  0xdc   :  { %143 = vrcp.f32 %v87_v46 }
  0xe2   :  { %v142_v47 = vpop.eup %141 }
  0xe3   :  { %v93_v50 = vmul.f32 %v142_v47, %v81_v39 }
  0xe6   :  { %v144_v48 = vpop.eup %143 }
  0xe7   :  { %v89_v49 = vmul.f32 %v144_v48, %v81_v39 }
  0xe9   :  { %v96_v51 = vadd.f32 %v93_v50, %v89_v49  ;;  %v94_v53 = vmul.f32 %v93_v50, %v89_v49 }
  0xeb   :  { %v97_v52 = vadd.f32 1e-07, %v96_v51  ;;  %v95_v54 = vmul.f32 2.0, %v94_v53 }
  0xed   :  { %145 = vrcp.f32 %v97_v52 }
  0xf7   :  { %v146_v55 = vpop.eup %145 }
  0xf8   :  { %v99_v57 = vmul.f32 %v146_v55, %v95_v54 }
  0xfa   :  { %v101_v58 = vmul.f32 %v100_v56, %v99_v57 }
  0xfc   :  { %v102_v59 = vsel %vm19_vm1, %v101_v58, 0.0 }
  0xfd   :  { %103 = vadd.xlane.f32.xlu1 %v102_v59 }
 0x18a   :  { %v104_v60 = vpop.xlane.xlu1 %103 }
 0x18b   :  { %v105_v61 = vrot.slane %v104_v60, 4 }
 0x18d   :  { %v106_v62 = vadd.f32 %v105_v61, %v104_v60 }
 0x18f   :  { %v107_v63 = vrot.slane %v106_v62, 2 }
 0x191   :  { %v108_v0 = vadd.f32 %v107_v63, %v106_v62 }
 0x193   :  { %v109_v1 = vrot.slane %v108_v0, 1 }
 0x195   :  { %v110_v2 = vadd.f32 %v109_v1, %v108_v0 }
 0x197   :  { %133 = vpush %v110_v2 }
 0x1c8   :  { %s134_s16 = spop %133 }
 0x1c9   :  { %s114_s17 = smul.f32 0.125, %s134_s16 }
 0x1cb   :  { %s115_s18 = ssub.f32 1.0, %s114_s17 }
 0x1cd   :  { %117 = sst [smem:[#allocation5]] %s115_s18 }
 0x1ce   :  { %156 = shalt.err (!%p153_p2)
}
 0x1cf   :  { %s160_s25 = smov [#allocation5]  }
 0x1d0   :  { %125 = dma.smem_to_hbm %s160_s25, 16, %s212_s3, [#allocation6]  }
 0x1d1   :  { %157 = dma.done.wait [#allocation6], 16  }
 0x1d2   :  { %158 = vsyncadd [#allocation6], 4294967280 }
 0x1d3   :  { %129 = sfence }
 0x1d4   :  { %130 = vsyncpa [#allocation6], 1 }

</bundles_post_ra>
